<compile_context>
chip_gen: v7x
topology: tpu7x:2x2x1
jax: 0.10.0
libtpu: 0.0.40
codegen_flags: <defaults>
</compile_context>

<pallas_src>
import jax
import jax.numpy as jnp
from jax.experimental import pallas as pl
from jax.experimental.pallas import tpu as pltpu


def mlp_kernel(x_ref, params_ref, o_ref):
    p = params_ref[...]          # [Hp, 4] packed weights/biases (single load)
    x = x_ref[...]               # [1, Np] inputs along lanes
    w1 = p[:, 0:1]               # [Hp, 1]
    b1 = p[:, 1:2]               # [Hp, 1]
    w2 = p[:, 2:3]               # [Hp, 1]
    b2 = p[0:1, 3:4]             # [1, 1]
    # Layer 1 (F == 1): broadcast outer product + bias + ReLU, all VPU.
    h = jnp.maximum(w1 * x + b1, 0.0)                      # [Hp, Np]
    # Layer 2 (O == 1): elementwise multiply + sublane reduction (XLU) + bias.
    y = jnp.sum(h * w2, axis=0, keepdims=True) + b2        # [1, Np]
    o_ref[...] = y.astype(o_ref.dtype)                     # lane-dense store


def pack_params(w1, b1, w2, b2):
    """Pack (w1[1,H], b1[1,H], w2[H,1], b2[1,1]) into one [Hp, 4] f32 slab.

    Call ONCE at init / parameter-update time, not per forward call.
    Padded hidden rows (H not a multiple of 8) are zero in lanes 0..2 so they
    contribute exactly 0 to the output.
    """
    H = w1.shape[1]
    h_pad = 8 * pl.cdiv(H, 8)
    params = jnp.zeros((h_pad, 4), jnp.float32)
    params = params.at[:H, 0].set(w1[0, :].astype(jnp.float32))
    params = params.at[:H, 1].set(b1[0, :].astype(jnp.float32))
    params = params.at[:H, 2].set(w2[:, 0].astype(jnp.float32))
    params = params.at[:, 3].set(jnp.float32(b2.reshape(())))
    return params


def net_forward(x, params):
    """x: [N, 1] f32; params: [Hp, 4] packed slab from pack_params()."""
    N = x.shape[0]
    h_pad = params.shape[0]
    n_pad = 128 * pl.cdiv(N, 128)  # lane axis -> multiple of 128 (unmasked vst)

    # Single pad op ([N,1] -> [1,Np]); padded lanes are sliced off below.
    x_row = jnp.pad(x.reshape(1, N), ((0, 0), (0, n_pad - N)))

    # Whole problem fits in a few vregs: one invocation, full-array blocks,
    # explicit VMEM placement.  Do NOT add grid iterations at this size.
    full = lambda shape: pl.BlockSpec(
        shape, lambda: (0,) * len(shape), memory_space=pltpu.MemorySpace.VMEM
    )

    y_row = pl.pallas_call(
        mlp_kernel,
        out_shape=jax.ShapeDtypeStruct((1, n_pad), jnp.float32),
        grid=(),  # launch-bound problem: grid iterations would be pure overhead
        in_specs=[
            full((1, n_pad)),   # x_row
            full((h_pad, 4)),   # packed params (block == full array dims)
        ],
        out_specs=full((1, n_pad)),
        cost_estimate=pl.CostEstimate(
            flops=4 * n_pad * h_pad,
            transcendentals=0,
            bytes_accessed=(2 * n_pad + 4 * h_pad) * 4,
        ),
    )(x_row, params)

    return y_row[0, :N][:, None]  # back to [N, 1]
    # TODO(synk): if N scales to >=~100k samples, add a 1-D "parallel" grid
    # over the lane axis (block ~(1, 8192)) to stay under VMEM on v5e/v7x.


def init_params(key, n_feature, n_hidden, n_output):
    """Deterministic init matching PyTorch Linear's U(-1/sqrt(fan_in), 1/sqrt(fan_in))."""
    k1, k2, k3, k4 = jax.random.split(key, 4)
    bound1 = 1.0 / jnp.sqrt(jnp.float32(n_feature))
    bound2 = 1.0 / jnp.sqrt(jnp.float32(n_hidden))
    w1 = jax.random.uniform(k1, (n_feature, n_hidden), jnp.float32, -bound1, bound1)
    b1 = jax.random.uniform(k2, (1, n_hidden), jnp.float32, -bound1, bound1)
    w2 = jax.random.uniform(k3, (n_hidden, n_output), jnp.float32, -bound2, bound2)
    b2 = jax.random.uniform(k4, (1, n_output), jnp.float32, -bound2, bound2)
    return w1, b1, w2, b2


if __name__ == "__main__":
    n_feature, n_hidden, n_output = 1, 32, 1
    N = 100  # same as torch.linspace(-1, 1, 100) in the reference script

    key = jax.random.PRNGKey(0)
    w1, b1, w2, b2 = init_params(key, n_feature, n_hidden, n_output)

    # Packed once, reused every forward call (analogous to module parameters).
    params = pack_params(w1, b1, w2, b2)

    # input: x = unsqueeze(linspace(-1, 1, 100), dim=1) -> shape [100, 1]
    x = jnp.linspace(-1.0, 1.0, N, dtype=jnp.float32)[:, None]

    fwd = jax.jit(net_forward)
    y = fwd(x, params)
    y = jax.block_until_ready(y)

    # correctness check against plain JAX reference
    y_ref = jnp.maximum(x @ w1 + b1, 0.0) @ w2 + b2
    assert y.shape == (N, n_output)
    assert jnp.allclose(y, y_ref, atol=1e-5, rtol=1e-5)

    print("KERNEL_OK")
</pallas_src>

<mosaic_0001>
module attributes {stable_mosaic.version = 11 : i64} {
  func.func @mlp_kernel(%arg0: memref<1x128xf32, #tpu.memory_space<vmem>>, %arg1: memref<32x4xf32, #tpu.memory_space<vmem>>, %arg2: memref<1x128xf32, #tpu.memory_space<vmem>>) attributes {dimension_semantics = [], scalar_prefetch = 0 : i64, scratch_operands = 0 : i64, tpu.core_type = #tpu.core_type<tc>} {
    %c0 = arith.constant 0 : index
    %c0_0 = arith.constant 0 : index
    %0 = vector.load %arg1[%c0, %c0_0] : memref<32x4xf32, #tpu.memory_space<vmem>>, vector<32x4xf32>
    %c0_1 = arith.constant 0 : index
    %c0_2 = arith.constant 0 : index
    %1 = vector.load %arg0[%c0_1, %c0_2] : memref<1x128xf32, #tpu.memory_space<vmem>>, vector<1x128xf32>
    %2 = vector.extract_strided_slice %0 {offsets = [0, 0], sizes = [32, 1], strides = [1, 1]} : vector<32x4xf32> to vector<32x1xf32>
    %3 = vector.extract_strided_slice %0 {offsets = [0, 1], sizes = [32, 1], strides = [1, 1]} : vector<32x4xf32> to vector<32x1xf32>
    %4 = vector.extract_strided_slice %0 {offsets = [0, 2], sizes = [32, 1], strides = [1, 1]} : vector<32x4xf32> to vector<32x1xf32>
    %5 = vector.extract_strided_slice %0 {offsets = [0, 3], sizes = [1, 1], strides = [1, 1]} : vector<32x4xf32> to vector<1x1xf32>
    %6 = vector.broadcast %2 : vector<32x1xf32> to vector<32x128xf32>
    %7 = vector.broadcast %1 : vector<1x128xf32> to vector<32x128xf32>
    %8 = arith.mulf %6, %7 : vector<32x128xf32>
    %9 = vector.broadcast %3 : vector<32x1xf32> to vector<32x128xf32>
    %10 = arith.addf %8, %9 : vector<32x128xf32>
    %cst = arith.constant 0.000000e+00 : f32
    %11 = vector.broadcast %cst : f32 to vector<32x128xf32>
    %12 = arith.maximumf %10, %11 : vector<32x128xf32>
    %13 = vector.broadcast %4 : vector<32x1xf32> to vector<32x128xf32>
    %14 = arith.mulf %12, %13 : vector<32x128xf32>
    %cst_3 = arith.constant dense<0.000000e+00> : vector<128xf32>
    %15 = vector.multi_reduction <add>, %14, %cst_3 [0] : vector<32x128xf32> to vector<128xf32>
    %16 = vector.shape_cast %15 : vector<128xf32> to vector<1x128xf32>
    %17 = vector.broadcast %5 : vector<1x1xf32> to vector<1x128xf32>
    %18 = arith.addf %16, %17 : vector<1x128xf32>
    %c0_4 = arith.constant 0 : index
    %c0_5 = arith.constant 0 : index
    %19 = vector.load %arg2[%c0_4, %c0_5] : memref<1x128xf32, #tpu.memory_space<vmem>>, vector<1x128xf32>
    tpu.vector_store %arg2[%c0_4, %c0_5], %18 {strides = array<i32>} : memref<1x128xf32, #tpu.memory_space<vmem>>, vector<1x128xf32>,
    return
  }
}

</mosaic_0001>

<bundles_post_ra>
// kernel: net_forward.1
= control target key start
LH: loop header
LB: loop body
LE: loop exit
PB: predicated region body
PF: predicated region fallthrough
CT: control target
= control target key end

     0   :  { %v123_v0 = vmov 0   ;;  %v124_v4 = vmov 1   ;;  %v125_v6 = vmov 2   ;;  %v126_v7 = vmov 3   ;;  %s160_s1 = inlined_call_operand.vmem [shape: f32[32,4], index: 1, kind: input, shape index: {}]   ;;  %s161_s0 = inlined_call_operand.vmem [shape: f32[1,128], index: 0, kind: input, shape index: {}]   ;;  %s162_s2 = inlined_call_operand.vmem [shape: f32[1,128], index: 2, kind: output, shape index: {}]  }
   0x1   :  { %115 = vset.pattern.permute.xlu1 %v123_v0  ;;  %114 = vset.pattern.permute.xlu0 %v123_v0  ;;  %v13_v1 = vld [vmem:[%s160_s1 + $0x10] sm:$0xff]  ;;  %v11_v2 = vld [vmem:[%s160_s1] sm:$0xff]  ;;  %v12_v3 = vld [vmem:[%s160_s1 + $0x8] sm:$0xff] }
   0x2   :  { %28 = vperm.xlu1 %115, %v13_v1   ;;  %18 = vperm.xlu0 %114, %v11_v2   ;;  %v14_v5 = vld [vmem:[%s160_s1 + $0x18] sm:$0xff]  ;;  %v109_v14 = vld [vmem:[%s161_s0] ss:$0 sm:$0xff] }
   0x6   :  { %116 = vset.pattern.permute.xlu1 %v124_v4  ;;  %23 = vperm.xlu0 %114, %v12_v3  }
   0x7   :  { %47 = vperm.xlu1 %116, %v11_v2  }
   0xa   :  { %117 = vset.pattern.permute.xlu0 %v124_v4 }
   0xb   :  { %118 = vset.pattern.permute.xlu1 %v123_v0  ;;  %51 = vperm.xlu0 %117, %v12_v3  }
   0xc   :  { %33 = vperm.xlu1 %118, %v14_v5  }
   0xf   :  { %59 = vperm.xlu0 %117, %v14_v5  }
  0x10   :  { %119 = vset.pattern.permute.xlu1 %v124_v4 }
  0x11   :  { %55 = vperm.xlu1 %119, %v13_v1  }
  0x13   :  { %121 = vset.pattern.permute.xlu0 %v125_v6 }
  0x14   :  { %75 = vperm.xlu0 %121, %v12_v3  }
  0x15   :  { %120 = vset.pattern.permute.xlu1 %v125_v6 }
  0x16   :  { %71 = vperm.xlu1 %120, %v11_v2  }
  0x18   :  { %122 = vset.pattern.permute.xlu0 %v126_v7 }
  0x19   :  { %100 = vperm.xlu0 %122, %v11_v2  }
  0x1a   :  { %79 = vperm.xlu1 %120, %v13_v1  }
  0x1e   :  { %83 = vperm.xlu1 %120, %v14_v5  }
  0x81   :  { %v29_v8 = vpop.permute.xlu1 %28  ;;  %v19_v9 = vpop.permute.xlu0 %18 }
  0x82   :  { %v42_v15 = vmul.f32 %v109_v14, %v19_v9  ;;  %v44_v19 = vmul.f32 %v109_v14, %v29_v8 }
  0x85   :  { %v24_v10 = vpop.permute.xlu0 %23 }
  0x86   :  { %v48_v11 = vpop.permute.xlu1 %47  ;;  %v43_v16 = vmul.f32 %v109_v14, %v24_v10 }
  0x87   :  { %v62_v20 = vadd.f32 %v48_v11, %v42_v15 }
  0x89   :  { %v66_v25 = vmax.f32 %v62_v20, 0.0 }
  0x8a   :  { %v52_v12 = vpop.permute.xlu0 %51 }
  0x8b   :  { %v34_v13 = vpop.permute.xlu1 %33  ;;  %v63_v21 = vadd.f32 %v52_v12, %v43_v16 }
  0x8c   :  { %v45_v22 = vmul.f32 %v109_v14, %v34_v13 }
  0x8d   :  { %v67_v27 = vmax.f32 %v63_v21, 0.0 }
  0x8e   :  { %v60_v18 = vpop.permute.xlu0 %59 }
  0x8f   :  { %v65_v28 = vadd.f32 %v60_v18, %v45_v22 }
  0x90   :  { %v56_v17 = vpop.permute.xlu1 %55 }
  0x91   :  { %v64_v23 = vadd.f32 %v56_v17, %v44_v19  ;;  %v69_v34 = vmax.f32 %v65_v28, 0.0 }
  0x93   :  { %v76_v26 = vpop.permute.xlu0 %75  ;;  %v68_v29 = vmax.f32 %v64_v23, 0.0 }
  0x94   :  { %v87_v32 = vmul.f32 %v76_v26, %v67_v27 }
  0x95   :  { %v72_v24 = vpop.permute.xlu1 %71 }
  0x96   :  { %v86_v30 = vmul.f32 %v72_v24, %v66_v25 }
  0x98   :  { %v90_v35 = vadd.f32 %v87_v32, %v86_v30  ;;  %v101_v45 = vpop.permute.xlu0 %100 }
  0x99   :  { %v80_v31 = vpop.permute.xlu1 %79 }
  0x9a   :  { %v88_v33 = vmul.f32 %v80_v31, %v68_v29 }
  0x9c   :  { %v91_v37 = vadd.f32 %v90_v35, %v88_v33 }
  0x9d   :  { %v84_v36 = vpop.permute.xlu1 %83 }
  0x9e   :  { %v89_v38 = vmul.f32 %v84_v36, %v69_v34 }
  0xa0   :  { %v92_v39 = vadd.f32 %v91_v37, %v89_v38 }
  0xa2   :  { %v93_v40 = vrot.slane %v92_v39, 4 }
  0xa4   :  { %v94_v41 = vadd.f32 %v93_v40, %v92_v39 }
  0xa6   :  { %v95_v42 = vrot.slane %v94_v41, 2 }
  0xa8   :  { %v96_v43 = vadd.f32 %v95_v42, %v94_v41 }
  0xaa   :  { %v97_v44 = vrot.slane %v96_v43, 1 }
  0xac   :  { %v98_v46 = vadd.f32 %v97_v44, %v96_v43 }
  0xae   :  { %v103_v47 = vadd.f32 %v101_v45, %v98_v46 }
  0xb0   :  { %104 = vst [vmem:[%s162_s2] sm:$0x1] %v103_v47 }

</bundles_post_ra>
